<compile_context>
chip_gen: v5e
topology: v5e:2x2
jax: 0.10.0
libtpu: 0.0.40
codegen_flags: <defaults>
</compile_context>

<pallas_src>
import functools
import math

import jax
import jax.numpy as jnp
from jax.experimental import pallas as pl
from jax.experimental.pallas import tpu as pltpu


def _round_up(n, m):
    return (n + m - 1) // m * m


# ----------------------------- Pallas kernels -----------------------------

def _mm_kernel(*refs, relu, has_res):
    """acc += x @ w (bf16 in, f32 acc); epilogue: + bias [+ residual], ReLU."""
    if has_res:
        x_ref, w_ref, b_ref, r_ref, o_ref, acc_ref = refs
    else:
        x_ref, w_ref, b_ref, o_ref, acc_ref = refs
        r_ref = None

    k = pl.program_id(2)

    @pl.when(k == 0)
    def _():
        acc_ref[...] = jnp.zeros_like(acc_ref)

    acc_ref[...] += jnp.dot(x_ref[...], w_ref[...],
                            preferred_element_type=jnp.float32)

    @pl.when(k == pl.num_programs(2) - 1)
    def _():
        out = acc_ref[...] + b_ref[...]
        if has_res:
            out = out + r_ref[...].astype(jnp.float32)
        if relu:
            out = jnp.maximum(out, 0.0)
        o_ref[...] = out.astype(o_ref.dtype)


def _choose_m_tile(M):
    """(tm, Mp): bf16-packing-aligned rows, preferring no M padding."""
    if M <= 1024:
        tm = _round_up(M, 16)              # single row block
        return tm, tm
    for cand in range(1024, 255, -16):     # largest 16-aligned divisor in [256,1024]
        if M % cand == 0:
            return cand, M
    for cand in (1024, 512, 256, 128):     # else allow modest zero padding
        Mp = _round_up(M, cand)
        if Mp - M <= M // 8:
            return cand, Mp
    return 128, _round_up(M, 128)


def _choose_n_tile(M, N):
    """(tn, Np): lane-dense output blocks (network pre-pads channels to >=128)."""
    if N <= 128:
        return N, N                        # full-dim lane block
    Np = _round_up(N, 128)
    if M >= 1024 and Np % 512 == 0:
        return 512, Np
    if Np % 256 == 0:
        return 256, Np
    return 128, Np


def _choose_k_tile(K):
    """(tk, Kp): single full-dim K step when small; exact-divisor tiles else."""
    if K <= 1024:
        return K, K                        # no pad copy, one reduction step
    for cand in (512, 256, 384, 128):      # prefer 512/256 (MXU cadence); 384 only
        if K % cand == 0:                  # when it is an exact divisor (K=1152)
            return cand, K
    return 256, _round_up(K, 256)


@functools.partial(jax.jit, static_argnames=("relu", "out_dtype"))
def matmul_bias(x, w, bias, residual=None, *, relu, out_dtype=jnp.bfloat16):
    """out[m, n] = act(sum_k x[m,k]*w[k,n] + bias[n] (+ residual[m,n]))."""
    M, K = x.shape
    _, N = w.shape
    tm, Mp = _choose_m_tile(M)
    tn, Np = _choose_n_tile(M, N)
    tk, Kp = _choose_k_tile(K)

    # Megacore (v7x has 2 TensorCores): never launch a (1, 1, K) grid.
    if Mp // tm == 1 and Np // tn == 1 and M >= 32:
        tm = _round_up((Mp + 1) // 2, 16)
        Mp = 2 * tm

    xb = x.astype(jnp.bfloat16)
    if (Mp, Kp) != (M, K):
        xb = jnp.pad(xb, ((0, Mp - M), (0, Kp - K)))
    wb = w.astype(jnp.bfloat16)
    if (Kp, Np) != (K, N):
        wb = jnp.pad(wb, ((0, Kp - K), (0, Np - N)))
    bb = bias.astype(jnp.float32)
    if Np != N:
        bb = jnp.pad(bb, (0, Np - N))
    bb = bb.reshape(1, Np)

    has_res = residual is not None
    in_specs = [
        pl.BlockSpec((tm, tk), lambda m, n, k: (m, k)),
        pl.BlockSpec((tk, tn), lambda m, n, k: (k, n)),
        pl.BlockSpec((1, tn), lambda m, n, k: (0, n)),
    ]
    args = [xb, wb, bb]
    if has_res:
        rb = residual.astype(jnp.bfloat16)
        if (Mp, Np) != (M, N):
            rb = jnp.pad(rb, ((0, Mp - M), (0, Np - N)))
        in_specs.append(pl.BlockSpec((tm, tn), lambda m, n, k: (m, n)))
        args.append(rb)

    out = pl.pallas_call(
        functools.partial(_mm_kernel, relu=relu, has_res=has_res),
        out_shape=jax.ShapeDtypeStruct((Mp, Np), out_dtype),
        grid_spec=pltpu.PrefetchScalarGridSpec(
            num_scalar_prefetch=0,
            grid=(Mp // tm, Np // tn, Kp // tk),
            in_specs=in_specs,
            out_specs=pl.BlockSpec((tm, tn), lambda m, n, k: (m, n)),
            scratch_shapes=[pltpu.VMEM((tm, tn), jnp.float32)],
        ),
        compiler_params=pltpu.CompilerParams(
            dimension_semantics=("parallel", "parallel", "arbitrary"),
            vmem_limit_bytes=48 * 1024 * 1024),
    )(*args)
    if (Mp, Np) != (M, N):
        out = out[:M, :N]
    return out


def _pool_kernel(x_ref, o_ref, *, op, k_taps):
    """Reduce the leading tap axis of a (k_taps, tr, C) block with a VPU tree."""
    if op == "max":
        r = x_ref[0]                           # bf16 max is exact -> no upcast
        for t in range(1, k_taps):
            r = jnp.maximum(r, x_ref[t])
    else:
        r = x_ref[0].astype(jnp.float32)       # mean accumulates in f32
        for t in range(1, k_taps):
            r = r + x_ref[t].astype(jnp.float32)
        r = r * (1.0 / k_taps)
    o_ref[...] = r.astype(o_ref.dtype)


def _choose_rows(R, bytes_per_row, cap_bytes=4 << 20):
    """Row tile for pooling: divisor-preferring, VMEM-capped, multiple of 8."""
    cap = max(8, min(512, (cap_bytes // max(bytes_per_row, 1)) // 8 * 8))
    if R <= cap:
        tr = _round_up(R, 8)
        return tr, tr
    for cand in range(cap, 7, -8):
        if R % cand == 0:
            return cand, R
    return cap, _round_up(R, cap)


@functools.partial(jax.jit, static_argnames=("op", "out_dtype"))
def pool_reduce(x, *, op, out_dtype=jnp.float32):
    """Reduce (max or mean) over the leading axis of [T, R, C] -> [R, C]."""
    T, R, C = x.shape
    tr, Rp = _choose_rows(R, T * C * x.dtype.itemsize)
    if Rp != R:
        x = jnp.pad(x, ((0, 0), (0, Rp - R), (0, 0)))
    out = pl.pallas_call(
        functools.partial(_pool_kernel, op=op, k_taps=T),
        out_shape=jax.ShapeDtypeStruct((Rp, C), out_dtype),
        grid_spec=pltpu.PrefetchScalarGridSpec(
            num_scalar_prefetch=0,
            grid=(Rp // tr,),
            in_specs=[pl.BlockSpec((T, tr, C), lambda i: (0, i, 0))],
            out_specs=pl.BlockSpec((tr, C), lambda i: (i, 0)),
        ),
        compiler_params=pltpu.CompilerParams(
            dimension_semantics=("parallel",),
            vmem_limit_bytes=48 * 1024 * 1024),
    )(x)
    return out[:R]


# ------------------------------- JAX glue ----------------------------------

def _im2col(x, kh, kw, stride, pad):
    """x: NHWC -> patches [N*Ho*Wo, kh*kw*C] (kernel-position-major, C-minor)."""
    N, H, W, C = x.shape
    Ho = (H + 2 * pad - kh) // stride + 1
    Wo = (W + 2 * pad - kw) // stride + 1
    if kh == 1 and kw == 1 and pad == 0:
        xs = x[:, ::stride, ::stride, :]          # no HBM inflation for 1x1
        return xs.reshape(N * Ho * Wo, C), Ho, Wo
    # TODO(synk): direct conv (taps as a reduction grid axis) would avoid this
    # kh*kw HBM inflation; for now the im2col is at least fused into one jit.
    xp = jnp.pad(x, ((0, 0), (pad, pad), (pad, pad), (0, 0)))
    cols = []
    for i in range(kh):
        for j in range(kw):
            cols.append(xp[:, i:i + Ho * stride:stride,
                           j:j + Wo * stride:stride, :])
    patches = jnp.concatenate(cols, axis=-1)
    return patches.reshape(N * Ho * Wo, kh * kw * C), Ho, Wo


@functools.partial(jax.jit, static_argnames=("stride", "pad", "relu"))
def conv_bn(x, w, bias, *, stride, pad, relu, residual=None):
    """Conv2d + folded BatchNorm (+ fused residual add) + optional ReLU."""
    N = x.shape[0]
    kh, kw, cin, cout = w.shape
    patches, Ho, Wo = _im2col(x, kh, kw, stride, pad)
    res2 = residual.reshape(N * Ho * Wo, cout) if residual is not None else None
    out = matmul_bias(patches, w.reshape(kh * kw * cin, cout), bias,
                      res2, relu=relu)
    return out.reshape(N, Ho, Wo, cout)


@functools.partial(jax.jit, static_argnames=("k", "stride", "pad"))
def maxpool2d(x, k=3, stride=2, pad=1):
    N, H, W, C = x.shape
    Ho = (H + 2 * pad - k) // stride + 1
    Wo = (W + 2 * pad - k) // stride + 1
    xp = jnp.pad(x, ((0, 0), (pad, pad), (pad, pad), (0, 0)),
                 constant_values=float("-inf"))
    taps = [xp[:, i:i + Ho * stride:stride,
               j:j + Wo * stride:stride, :].reshape(N * Ho * Wo, C)
            for i in range(k) for j in range(k)]
    p = jnp.stack(taps, axis=0)                    # [k*k, R, C] taps leading
    out = pool_reduce(p, op="max", out_dtype=x.dtype)
    return out.reshape(N, Ho, Wo, C)


# --------------------------- parameter creation -----------------------------

def _key_stream(seed):
    base = jax.random.PRNGKey(seed)
    i = 0
    while True:
        yield jax.random.fold_in(base, i)
        i += 1


def _cpad(c):
    """Lane-dense channel count (pads 64 -> 128; ResNet widths >=128 untouched)."""
    return max(c, 128)


def _conv_bn_params(kg, kh, kw, cin, cout, cin_p=None, cout_p=None):
    cin_p = cin if cin_p is None else cin_p
    cout_p = cout if cout_p is None else cout_p
    std = math.sqrt(2.0 / (kh * kw * cin))
    w = std * jax.random.normal(next(kg), (kh, kw, cin, cout), jnp.float32)
    gamma = 1.0 + 0.1 * jax.random.normal(next(kg), (cout,), jnp.float32)
    beta = 0.1 * jax.random.normal(next(kg), (cout,), jnp.float32)
    mean = 0.1 * jax.random.normal(next(kg), (cout,), jnp.float32)
    var = 1.0 + 0.1 * jax.random.uniform(next(kg), (cout,), jnp.float32)
    scale = gamma / jnp.sqrt(var + 1e-5)
    bias = beta - mean * scale
    # Fold the BN scale into the conv weights, then zero-pad channels so every
    # matmul output (and downstream K) is lane-dense (>=128 lanes).
    w_folded = w * scale[None, None, None, :]
    w_folded = jnp.pad(w_folded,
                       ((0, 0), (0, 0), (0, cin_p - cin), (0, cout_p - cout)))
    bias = jnp.pad(bias, (0, cout_p - cout))
    return {"w": w_folded.astype(jnp.bfloat16), "b": bias}


def make_resnet50_params(seed=0, num_classes=10):
    kg = _key_stream(seed)
    params = {"conv1": _conv_bn_params(kg, 7, 7, 3, 64,
                                       cin_p=3, cout_p=_cpad(64))}
    cfg = [(64, 3, 1), (128, 4, 2), (256, 6, 2), (512, 3, 2)]  # ResNet-50
    in_ch = 64
    layers = []
    for width, nblocks, stride in cfg:
        blocks = []
        for bi in range(nblocks):
            s = stride if bi == 0 else 1
            blk = {
                "stride": s,
                "conv1": _conv_bn_params(kg, 1, 1, in_ch, width,
                                         cin_p=_cpad(in_ch), cout_p=_cpad(width)),
                "conv2": _conv_bn_params(kg, 3, 3, width, width,
                                         cin_p=_cpad(width), cout_p=_cpad(width)),
                "conv3": _conv_bn_params(kg, 1, 1, width, width * 4,
                                         cin_p=_cpad(width),
                                         cout_p=_cpad(width * 4)),
            }
            if s != 1 or in_ch != width * 4:
                blk["down"] = _conv_bn_params(kg, 1, 1, in_ch, width * 4,
                                              cin_p=_cpad(in_ch),
                                              cout_p=_cpad(width * 4))
            blocks.append(blk)
            in_ch = width * 4
        layers.append(blocks)
    params["layers"] = layers
    # Classifier: pad the output lanes to 128 (lane-dense stores), slice later.
    ncp = _round_up(num_classes, 128)
    fc_std = 1.0 / math.sqrt(2048.0)
    fc_w = fc_std * jax.random.normal(next(kg), (2048, num_classes), jnp.float32)
    fc_b = fc_std * jax.random.normal(next(kg), (num_classes,), jnp.float32)
    params["fc"] = {
        "w": jnp.pad(fc_w, ((0, 0), (0, ncp - num_classes))),
        "b": jnp.pad(fc_b, (0, ncp - num_classes)),
        "num_classes": num_classes,
    }
    return params


# ------------------------------ model forward -------------------------------

def _bottleneck(x, blk):
    s = blk["stride"]
    p1, p2, p3 = blk["conv1"], blk["conv2"], blk["conv3"]
    out = conv_bn(x, p1["w"], p1["b"], stride=1, pad=0, relu=True)
    out = conv_bn(out, p2["w"], p2["b"], stride=s, pad=1, relu=True)
    if "down" in blk:
        pd = blk["down"]
        identity = conv_bn(x, pd["w"], pd["b"], stride=s, pad=0, relu=False)
    else:
        identity = x
    # Residual add + ReLU fused into the conv3 matmul epilogue.
    out = conv_bn(out, p3["w"], p3["b"], stride=1, pad=0, relu=True,
                  residual=identity)
    return out


def resnet50_forward(x_nchw, params, *, training=True):
    # NCHW (PyTorch) -> NHWC (TPU lane-friendly)
    x = jnp.transpose(x_nchw, (0, 2, 3, 1)).astype(jnp.float32)
    c1 = params["conv1"]
    x = conv_bn(x, c1["w"], c1["b"], stride=2, pad=3, relu=True)
    x = maxpool2d(x, 3, 2, 1)
    for layer in params["layers"]:
        for blk in layer:
            x = _bottleneck(x, blk)
    # global average pool + flatten: f = x.view(N, -1) after avg_pool2d
    N, H, W, C = x.shape
    p = jnp.transpose(x.reshape(N, H * W, C), (1, 0, 2))   # [H*W, N, C]
    f = pool_reduce(p, op="mean", out_dtype=jnp.float32)   # [N, 2048]
    if not training:
        return f
    y = matmul_bias(f, params["fc"]["w"], params["fc"]["b"],
                    relu=False, out_dtype=jnp.float32)     # [N, 128]
    return y[:, :params["fc"]["num_classes"]]              # [N, num_classes]


# ---------------------------------- main -------------------------------------

if __name__ == "__main__":
    num_classes = 10
    key = jax.random.PRNGKey(0)
    x = jax.random.normal(key, (2, 3, 32, 32), jnp.float32)  # NCHW input
    params = make_resnet50_params(seed=0, num_classes=num_classes)

    y = resnet50_forward(x, params, training=True)
    y = jax.block_until_ready(y)
    assert y.shape == (2, num_classes), y.shape

    f = resnet50_forward(x, params, training=False)
    f = jax.block_until_ready(f)
    assert f.shape == (2, 2048), f.shape

    print("KERNEL_OK")
</pallas_src>

<mosaic_0001>
module attributes {stable_mosaic.version = 11 : i64} {
  func.func @_mm_kernel(%arg0: i32, %arg1: i32, %arg2: i32, %arg3: memref<256x147xbf16, #tpu.memory_space<vmem>>, %arg4: memref<147x128xbf16, #tpu.memory_space<vmem>>, %arg5: memref<1x128xf32, #tpu.memory_space<vmem>>, %arg6: memref<256x128xbf16, #tpu.memory_space<vmem>>, %arg7: memref<256x128xf32, #tpu.memory_space<vmem>>) attributes {dimension_semantics = [#tpu.dimension_semantics<parallel>, #tpu.dimension_semantics<parallel>, #tpu.dimension_semantics<arbitrary>], iteration_bounds = array<i64: 2, 1, 1>, scalar_prefetch = 0 : i64, scratch_operands = 1 : i64, tpu.core_type = #tpu.core_type<tc>, window_params = [{transform_indices = @transform_0, window_bounds = array<i64: 256, 147>}, {transform_indices = @transform_1, window_bounds = array<i64: 147, 128>}, {transform_indices = @transform_2, window_bounds = array<i64: 1, 128>}, {transform_indices = @transform_3, window_bounds = array<i64: 256, 128>}]} {
    %c0_i32 = arith.constant 0 : i32
    %0 = arith.cmpi eq, %arg2, %c0_i32 : i32
    %1 = arith.extui %0 : i1 to i32
    %c0_i32_0 = arith.constant 0 : i32
    %2 = arith.cmpi ne, %1, %c0_i32_0 : i32
    scf.if %2 {
      %cst_10 = arith.constant 0.000000e+00 : f32
      %12 = vector.broadcast %cst_10 : f32 to vector<256x128xf32>
      %c0_11 = arith.constant 0 : index
      %c0_12 = arith.constant 0 : index
      %13 = vector.load %arg7[%c0_11, %c0_12] : memref<256x128xf32, #tpu.memory_space<vmem>>, vector<256x128xf32>
      tpu.vector_store %arg7[%c0_11, %c0_12], %12 {strides = array<i32>} : memref<256x128xf32, #tpu.memory_space<vmem>>, vector<256x128xf32>,
    } else {
    }
    %c0 = arith.constant 0 : index
    %c0_1 = arith.constant 0 : index
    %3 = vector.load %arg7[%c0, %c0_1] : memref<256x128xf32, #tpu.memory_space<vmem>>, vector<256x128xf32>
    %c0_2 = arith.constant 0 : index
    %c0_3 = arith.constant 0 : index
    %4 = vector.load %arg3[%c0_2, %c0_3] : memref<256x147xbf16, #tpu.memory_space<vmem>>, vector<256x147xbf16>
    %c0_4 = arith.constant 0 : index
    %c0_5 = arith.constant 0 : index
    %5 = vector.load %arg4[%c0_4, %c0_5] : memref<147x128xbf16, #tpu.memory_space<vmem>>, vector<147x128xbf16>
    %cst = arith.constant dense<0.000000e+00> : vector<256x128xf32>
    %6 = tpu.matmul %4, %5, %cst {dimension_numbers = #tpu.dot_dimension_numbers<[1], [0], [0], [1], [0, 0, 1, 1], [], []>} : vector<256x147xbf16>, vector<147x128xbf16>, vector<256x128xf32> -> vector<256x128xf32>
    %7 = arith.addf %3, %6 : vector<256x128xf32>
    %c0_6 = arith.constant 0 : index
    %c0_7 = arith.constant 0 : index
    %8 = vector.load %arg7[%c0_6, %c0_7] : memref<256x128xf32, #tpu.memory_space<vmem>>, vector<256x128xf32>
    tpu.vector_store %arg7[%c0_6, %c0_7], %7 {strides = array<i32>} : memref<256x128xf32, #tpu.memory_space<vmem>>, vector<256x128xf32>,
    %c0_i32_8 = arith.constant 0 : i32
    %9 = arith.cmpi eq, %arg2, %c0_i32_8 : i32
    %10 = arith.extui %9 : i1 to i32
    %c0_i32_9 = arith.constant 0 : i32
    %11 = arith.cmpi ne, %10, %c0_i32_9 : i32
    scf.if %11 {
      %c0_10 = arith.constant 0 : index
      %c0_11 = arith.constant 0 : index
      %12 = vector.load %arg7[%c0_10, %c0_11] : memref<256x128xf32, #tpu.memory_space<vmem>>, vector<256x128xf32>
      %c0_12 = arith.constant 0 : index
      %c0_13 = arith.constant 0 : index
      %13 = vector.load %arg5[%c0_12, %c0_13] : memref<1x128xf32, #tpu.memory_space<vmem>>, vector<1x128xf32>
      %14 = vector.broadcast %13 : vector<1x128xf32> to vector<256x128xf32>
      %15 = arith.addf %12, %14 : vector<256x128xf32>
      %cst_14 = arith.constant 0.000000e+00 : f32
      %16 = vector.broadcast %cst_14 : f32 to vector<256x128xf32>
      %17 = arith.maximumf %15, %16 : vector<256x128xf32>
      %18 = arith.truncf %17 : vector<256x128xf32> to vector<256x128xbf16>
      %c0_15 = arith.constant 0 : index
      %c0_16 = arith.constant 0 : index
      %19 = vector.load %arg6[%c0_15, %c0_16] : memref<256x128xbf16, #tpu.memory_space<vmem>>, vector<256x128xbf16>
      tpu.vector_store %arg6[%c0_15, %c0_16], %18 {strides = array<i32>} : memref<256x128xbf16, #tpu.memory_space<vmem>>, vector<256x128xbf16>,
    } else {
    }
    return
  }
  func.func @transform_0(%arg0: i32, %arg1: i32, %arg2: i32) -> (i32, i32) {
    %c0_i32 = arith.constant 0 : i32
    return %arg0, %arg2 : i32, i32
  }
  func.func @transform_1(%arg0: i32, %arg1: i32, %arg2: i32) -> (i32, i32) {
    %c0_i32 = arith.constant 0 : i32
    return %arg2, %arg1 : i32, i32
  }
  func.func @transform_2(%arg0: i32, %arg1: i32, %arg2: i32) -> (i32, i32) {
    %c0_i32 = arith.constant 0 : i32
    %c0_i32_0 = arith.constant 0 : i32
    return %c0_i32, %arg1 : i32, i32
  }
  func.func @transform_3(%arg0: i32, %arg1: i32, %arg2: i32) -> (i32, i32) {
    %c0_i32 = arith.constant 0 : i32
    return %arg0, %arg1 : i32, i32
  }
}

</mosaic_0001>

<bundles_post_ra>
// kernel: matmul_bias.1
= control target key start
LH: loop header
LB: loop body
LE: loop exit
PB: predicated region body
PF: predicated region fallthrough
CT: control target
= control target key end

     0   :  { %8 = vsyncpa [#allocation4], 0  ;;  %s1953_s0 = inlined_call_operand.vmem [shape: bf16[512,147], index: 0, kind: input, shape index: {}]   ;;  %s1954_s1 = inlined_call_operand.vmem [shape: bf16[147,128], index: 1, kind: input, shape index: {}]   ;;  %s1955_s2 = inlined_call_operand.vmem [shape: f32[1,128], index: 2, kind: input, shape index: {}]   ;;  %s1956_s3 = inlined_call_operand.hbm [shape: bf16[512,128], index: 3, kind: output, shape index: {}]  }
   0x1   :  { %10 = vsyncpa [#allocation4 + $0x1], 0  ;;  %s1679_s12 = smov 0   ;;  %s1681_s13 = smov 0  }
   0x2   :  { %s1683_s14 = smov 0   ;;  %s1685_s15 = smov 0  }
   0x3   :  { %s1687_s16 = smov 0   ;;  %s1689_s17 = smov 0  }
   0x4 LB: > { %s1173_s18 = sadd.s32 4294967295, %s1654_s17   ;;  %s1174_s19 = sadd.s32 4294967294, %s1654_s17   ;;  %s1654_s17 = sphi %s1689_s17, %s16_s17   ;;  %s1650_s16 = sphi %s1687_s16, %s1963_s16   ;;  %s1646_s15 = sphi %s1685_s15, %s1962_s15   ;;  %s1642_s14 = sphi %s1683_s14, %s1961_s14   ;;  %s1638_s13 = sphi %s1681_s13, %s1960_s13   ;;  %s1634_s12 = sphi %s1679_s12, %s1959_s12  }
   0x5   : > { %s35_s20 = sadd.s32 1, %s1650_s16  ;;  %s126_s21 = sadd.s32 1, %s1642_s14 }
   0x6   : > { %p37_p0 = scmp.ge.s32.totalorder %s35_s20, 2  ;;  %p136_p1 = scmp.ne.s32.totalorder %s1642_s14, %s1638_s13 }
   0x7   : > { %p137_p2 = scmp.eq.s32.totalorder %s1173_s18, 1  ;;  %p142_p3 = scmp.ne.s32.totalorder %s1638_s13, %s1634_s12 }
   0x8   : > { %s1965_s20 = smov (%p37_p0, %s35_s20), 0  ;;  %p143_p5 = scmp.eq.s32.totalorder %s1174_s19, 1 }
   0x9   : > { %p1719_p4 = por %p137_p2, %p136_p1  ;;  %s121_s23 = ssub.s32 %s1650_s16, %s1965_s20 }
   0xa   : > { %p1179_p6 = scmp.ge.s32.totalorder %s1654_s17, 1  ;;  %p124_p7 = scmp.eq.s32.totalorder %s121_s23, 0 }
   0xb   : > { %p1726_p8 = por %p143_p5, %p142_p3  ;;  %p194_p9 = scmp.lt.s32.totalorder %s1654_s17, 3 }
   0xc   : > { %s1732_s25 = scalar_select %p124_p7, %s1642_s14, %s126_s21  }
   0xd   : > { %p195_p10 = pnand %p1179_p6, %p194_p9 }
   0xe   : > { %s1181_s30 = sshll.u32 (!%p195_p10), %s1646_s15, 5  ;;  %s231_s9 = sand.u32 (!%p195_p10), 1, %s1638_s13  }
   0xf   : > { %198 = sbr.rel (%p195_p10) target bundleno = 316 (0x13c), region = 32  ;;  %p236_p11 = scmp.lt.s32.totalorder (!%p195_p10), %s1181_s30, 63 }
  0x10   : > { %s1180_s10 = sshll.u32 (!%p195_p10), %s231_s9, 7  ;;  %s1411_s18 = sshll.u32 (!%p195_p10), %s1646_s15, 7 }
  0x11   : > { %s1864_s11 = scalar_lea.vmem (!%p195_p10), [#allocation3], %s1180_s10  ;;  %s1058_s23 = scalar_lea.hbm (!%p195_p10), %s1956_s3, %s1411_s18 }
  0x12   : > { %s1059_s15 = sshll.u32 (!%p195_p10), %s1864_s11, 4  ;;  %s1061_s26 = sshll.u32 (!%p195_p10), %s1058_s23, 4  ;;  %s1060_s15 = int_to_ptr.vmem [resolvable:$true] %s1059_s15  ;;  %s1062_s26 = int_to_ptr.hbm [resolvable:$true] %s1061_s26 }
  0x13   : > { %s1046_s27 = scalar_lea.sflag (!%p195_p10), [#allocation4], %s231_s9  ;;  %s1590_s28 = sshra.s32 (!%p195_p10), %s1062_s26, 4  ;;  %s1591_s28 = int_to_ptr.hbm [resolvable:$true] %s1590_s28 }
  0x14   : > { %v1409_v0 = vld [vmem:[%s1954_s1 + $0x38] sm:$0xff]  ;;  %v378_v1 = vld [vmem:[%s1954_s1 + $0x48] sm:$0x3]  ;;  %vm629_vm0 = vcmask 1040384   ;;  %vm630_vm1 = vcmask 1041408   ;;  %v1408_v3 = vld [vmem:[%s1954_s1 + $0x30] sm:$0xff]  ;;  %p1597_p1 = scmp.lt.s32.totalorder %s1591_s28, %s1956_s3 }
  0x15   : > { %v560_v2 = vunpack.c.l.b16 %v378_v1  ;;  %636 = vmatpush.bf16.msra.mxu0 %v1409_v0  ;;  %1507 = vmatpush.bf16.msra.mxu2 %v1409_v0  ;;  %v1656_v4 = vmov 65535   ;;  %s1967_s30 = smov (!%p236_p11, %s1181_s30), 63  ;;  %v1407_v9 = vld [vmem:[%s1954_s1 + $0x28] sm:$0xff]  ;;  %v1410_v10 = vld [vmem:[%s1954_s1 + $0x40] sm:$0xff]  ;;  %vm580_vm2 = vcmask 154624   ;;  %v1405_v18 = vld [vmem:[%s1954_s1 + $0x18] sm:$0xff] }
  0x16   : > { %v631_v5 = vsel %vm629_vm0, 4294967295, %v1656_v4  ;;  %s1369_s8 = sshll.u32 %s1967_s30, 3  ;;  %v1406_v14 = vld [vmem:[%s1954_s1 + $0x20] sm:$0xff]  ;;  %v1404_v19 = vld [vmem:[%s1954_s1 + $0x10] sm:$0xff]  ;;  %v1403_v20 = vld [vmem:[%s1954_s1 + $0x8] sm:$0xff]  ;;  %s1592_s29 = scalar_lea.hbm %s1591_s28, 128 }
  0x17   : > { %v570_v6 = vpack.c.b16 %v560_v2, %v560_v2  ;;  %v632_v7 = vsel %vm630_vm1, %v631_v5, 0  ;;  %s1753_s19 = scalar_lea.vmem %s1953_s0, %s1369_s8  ;;  %v1402_v26 = vld [vmem:[%s1954_s1] sm:$0xff]  ;;  %p1593_p12 = scmp.ne.s32.totalorder %s1591_s28, %s1592_s29 }
  0x18   : > { %v1370_v11 = vld [vmem:[%s1753_s19 + $0x4] sm:$0xf]  ;;  %v1188_v12 = vld [vmem:[%s1753_s19 + $0x8] sm:$0xf0]  ;;  %v1388_v15 = vld [vmem:[%s1753_s19 + $0x94] sm:$0xf] }
  0x19   : > { %v634_v8 = vand.u32 %v632_v7, %v570_v6  ;;  %637 = vmatpush.bf16.msra.mxu0 %v1408_v3  ;;  %1508 = vmatpush.bf16.msra.mxu2 %v1408_v3  ;;  %v1191_v13 = vor.u32 %v1370_v11, %v1188_v12  ;;  %v1260_v16 = vld [vmem:[%s1753_s19 + $0x98] sm:$0xf0]  ;;  %v1372_v21 = vld [vmem:[%s1753_s19 + $0x14] sm:$0xf]  ;;  %v1390_v23 = vld [vmem:[%s1753_s19 + $0xa4] sm:$0xf]  ;;  %p1594_p13 = pnand %p1593_p12, %p1719_p4 }
  0x1a   : > { %v1263_v17 = vor.u32 %v1388_v15, %v1260_v16  ;;  %v1196_v22 = vld [vmem:[%s1753_s19 + $0x18] sm:$0xf0]  ;;  %v1268_v24 = vld [vmem:[%s1753_s19 + $0xa8] sm:$0xf0]  ;;  %v1186_v27 = vld [vmem:[%s1753_s19] sm:$0xf] }
  0x1b   : > { %731 = vmatpush.bf16.msra.mxu1 %v634_v8  ;;  %1515 = vmatpush.bf16.msra.mxu3 %v634_v8  ;;  %v1199_v25 = vor.u32 %v1372_v21, %v1196_v22  ;;  %v1371_v28 = vld [vmem:[%s1753_s19 + $0x4] sm:$0xf0]  ;;  %v1250_v29 = vld [vmem:[%s1753_s19 + $0x80] sm:$0xf]  ;;  %v1271_v31 = vor.u32 %v1390_v23, %v1268_v24  ;;  %v1374_v34 = vld [vmem:[%s1753_s19 + $0x24] sm:$0xf]  ;;  %p1595_p0 = pneg %p1594_p13 }
  0x1c   : > { %v1387_v30 = vld [vmem:[%s1753_s19 + $0x84] sm:$0xf0]  ;;  %v1187_v32 = vor.u32 %v1371_v28, %v1186_v27  ;;  %v1204_v35 = vld [vmem:[%s1753_s19 + $0x28] sm:$0xf0]  ;;  %v1392_v36 = vld [vmem:[%s1753_s19 + $0xb4] sm:$0xf] }
  0x1d   : > { %638 = vmatpush.bf16.msra.mxu0 %v1407_v9  ;;  %1509 = vmatpush.bf16.msra.mxu2 %v1407_v9  ;;  %v1251_v33 = vor.u32 %v1387_v30, %v1250_v29  ;;  %v1276_v37 = vld [vmem:[%s1753_s19 + $0xb8] sm:$0xf0]  ;;  %v1207_v38 = vor.u32 %v1374_v34, %v1204_v35  ;;  %v1194_v39 = vld [vmem:[%s1753_s19 + $0x10] sm:$0xf]  ;;  %v1373_v40 = vld [vmem:[%s1753_s19 + $0x14] sm:$0xf0] }
  0x1e   : > { %v1258_v41 = vld [vmem:[%s1753_s19 + $0x90] sm:$0xf]  ;;  %v1389_v42 = vld [vmem:[%s1753_s19 + $0x94] sm:$0xf0]  ;;  %v1279_v43 = vor.u32 %v1392_v36, %v1276_v37  ;;  %v1195_v44 = vor.u32 %v1373_v40, %v1194_v39  ;;  %v1376_v46 = vld [vmem:[%s1753_s19 + $0x34] sm:$0xf] }
  0x1f   : > { %732 = vmatpush.bf16.msra.mxu1 %v1410_v10  ;;  %1516 = vmatpush.bf16.msra.mxu3 %v1410_v10  ;;  %v1259_v45 = vor.u32 %v1389_v42, %v1258_v41  ;;  %v1212_v47 = vld [vmem:[%s1753_s19 + $0x38] sm:$0xf0]  ;;  %v1394_v48 = vld [vmem:[%s1753_s19 + $0xc4] sm:$0xf]  ;;  %v1284_v49 = vld [vmem:[%s1753_s19 + $0xc8] sm:$0xf0] }
  0x20   : > { %v1215_v50 = vor.u32 %v1376_v46, %v1212_v47  ;;  %v1202_v51 = vld [vmem:[%s1753_s19 + $0x20] sm:$0xf]  ;;  %v1375_v52 = vld [vmem:[%s1753_s19 + $0x24] sm:$0xf0]  ;;  %v1287_v55 = vor.u32 %v1394_v48, %v1284_v49  ;;  %v1378_v58 = vld [vmem:[%s1753_s19 + $0x44] sm:$0xf] }
  0x21   : > { %639 = vmatpush.bf16.msra.mxu0 %v1406_v14  ;;  %1510 = vmatpush.bf16.msra.mxu2 %v1406_v14  ;;  %v1266_v53 = vld [vmem:[%s1753_s19 + $0xa0] sm:$0xf]  ;;  %v1391_v54 = vld [vmem:[%s1753_s19 + $0xa4] sm:$0xf0]  ;;  %v1203_v56 = vor.u32 %v1375_v52, %v1202_v51  ;;  %v1220_v59 = vld [vmem:[%s1753_s19 + $0x48] sm:$0xf0] }
  0x22   : > { %1348 = vmatmul.msk.bf16.vlgmr.msra.gmra.mxu1 %vm580_vm2, %v1191_v13  ;;  %1357 = vmatmul.msk.bf16.vlgmr.msra.gmra.mxu3 %vm580_vm2, %v1263_v17  ;;  %v1267_v57 = vor.u32 %v1391_v54, %v1266_v53  ;;  %v1396_v60 = vld [vmem:[%s1753_s19 + $0xd4] sm:$0xf]  ;;  %v1292_v61 = vld [vmem:[%s1753_s19 + $0xd8] sm:$0xf0]  ;;  %v1223_v62 = vor.u32 %v1378_v58, %v1220_v59  ;;  %v1210_v63 = vld [vmem:[%s1753_s19 + $0x30] sm:$0xf] }
  0x23   : > { %v1377_v0 = vld [vmem:[%s1753_s19 + $0x34] sm:$0xf0]  ;;  %v1274_v1 = vld [vmem:[%s1753_s19 + $0xb0] sm:$0xf]  ;;  %v1295_v3 = vor.u32 %v1396_v60, %v1292_v61  ;;  %v1380_v6 = vld [vmem:[%s1753_s19 + $0x54] sm:$0xf] }
  0x24   : > { %v1393_v2 = vld [vmem:[%s1753_s19 + $0xb4] sm:$0xf0]  ;;  %v1211_v4 = vor.u32 %v1377_v0, %v1210_v63  ;;  %v1228_v7 = vld [vmem:[%s1753_s19 + $0x58] sm:$0xf0]  ;;  %v1398_v8 = vld [vmem:[%s1753_s19 + $0xe4] sm:$0xf] }
  0x25   : > { %640 = vmatpush.bf16.msra.mxu0 %v1405_v18  ;;  %1511 = vmatpush.bf16.msra.mxu2 %v1405_v18  ;;  %v1275_v5 = vor.u32 %v1393_v2, %v1274_v1  ;;  %v1300_v9 = vld [vmem:[%s1753_s19 + $0xe8] sm:$0xf0]  ;;  %v1231_v10 = vor.u32 %v1380_v6, %v1228_v7  ;;  %v1218_v11 = vld [vmem:[%s1753_s19 + $0x40] sm:$0xf]  ;;  %v1379_v12 = vld [vmem:[%s1753_s19 + $0x44] sm:$0xf0] }
  0x26   : > { %v1282_v13 = vld [vmem:[%s1753_s19 + $0xc0] sm:$0xf]  ;;  %v1395_v14 = vld [vmem:[%s1753_s19 + $0xc4] sm:$0xf0]  ;;  %v1303_v15 = vor.u32 %v1398_v8, %v1300_v9  ;;  %v1219_v16 = vor.u32 %v1379_v12, %v1218_v11  ;;  %v1382_v18 = vld [vmem:[%s1753_s19 + $0x64] sm:$0xf] }
  0x27   : > { %v1283_v17 = vor.u32 %v1395_v14, %v1282_v13  ;;  %v1308_v21 = vld [vmem:[%s1753_s19 + $0xf8] sm:$0xf0]  ;;  %v1226_v23 = vld [vmem:[%s1753_s19 + $0x50] sm:$0xf]  ;;  %v1381_v24 = vld [vmem:[%s1753_s19 + $0x54] sm:$0xf0] }
  0x28   : > { %v1227_v28 = vor.u32 %v1381_v24, %v1226_v23  ;;  %v1384_v30 = vld [vmem:[%s1753_s19 + $0x74] sm:$0xf]  ;;  %v1383_v34 = vld [vmem:[%s1753_s19 + $0x64] sm:$0xf0]  ;;  %v1298_v35 = vld [vmem:[%s1753_s19 + $0xe0] sm:$0xf] }
  0x29   : > { %641 = vmatpush.bf16.msra.mxu0 %v1404_v19  ;;  %1512 = vmatpush.bf16.msra.mxu2 %v1404_v19  ;;  %v1236_v19 = vld [vmem:[%s1753_s19 + $0x68] sm:$0xf0]  ;;  %v1399_v36 = vld [vmem:[%s1753_s19 + $0xe4] sm:$0xf0]  ;;  %v1386_v39 = vld [vmem:[%s1753_s19 + $0x84] sm:$0xf] }
  0x2a   : > { %v1239_v22 = vor.u32 %v1382_v18, %v1236_v19  ;;  %v1252_v40 = vld [vmem:[%s1753_s19 + $0x88] sm:$0xf0]  ;;  %v1242_v42 = vld [vmem:[%s1753_s19 + $0x70] sm:$0xf]  ;;  %v1401_v46 = vld [vmem:[%s1753_s19 + $0xf4] sm:$0xf0] }
  0x2b   : > { %v1255_v41 = vor.u32 %v1386_v39, %v1252_v40  ;;  %v1853_v54 = vld [vmem:[%s1955_s2] ss:$0 sm:$0xff]  ;;  %s1596_s5 = scalar_lea.hbm %s1956_s3, 256 }
  0x2c   : > { %p1598_p2 = scmp.lt.s32.totalorder %s1596_s5, %s1592_s29 }
  0x2d   : > { %642 = vmatpush.bf16.msra.mxu0 %v1403_v20  ;;  %1513 = vmatpush.bf16.msra.mxu2 %v1403_v20  ;;  %v1400_v20 = vld [vmem:[%s1753_s19 + $0xf4] sm:$0xf] }
  0x2e   : > { %v1311_v27 = vor.u32 %v1400_v20, %v1308_v21  ;;  %p1599_p3 = por %p1598_p2, %p1597_p1 }
  0x30   : > { %p1600_p5 = pnand %p1599_p3, %p1595_p0 }
  0x31   : > { %643 = vmatpush.bf16.msra.mxu0 %v1402_v26  ;;  %1514 = vmatpush.bf16.msra.mxu2 %v1402_v26  ;;  %v1397_v26 = vld [vmem:[%s1753_s19 + $0xd4] sm:$0xf0] }
  0x32   : > { %1349 = vmatmul.msk.bf16.gmra.mxu1 %vm580_vm2, %v1199_v25  ;;  %1358 = vmatmul.msk.bf16.gmra.mxu3 %vm580_vm2, %v1271_v31  ;;  %v1290_v25 = vld [vmem:[%s1753_s19 + $0xd0] sm:$0xf]  ;;  %v1244_v31 = vld [vmem:[%s1753_s19 + $0x78] sm:$0xf0] }
  0x33   : > { %v1291_v29 = vor.u32 %v1397_v26, %v1290_v25 }
  0x34   : > { %644 = vmatmul.bf16.vlgmr.msra.gmra.mxu0 %v1187_v32  ;;  %684 = vmatmul.bf16.vlgmr.msra.gmra.mxu2 %v1251_v33  ;;  %v1247_v32 = vor.u32 %v1384_v30, %v1244_v31  ;;  %v1234_v33 = vld [vmem:[%s1753_s19 + $0x60] sm:$0xf] }
  0x35   : > { %v1235_v37 = vor.u32 %v1383_v34, %v1234_v33 }
  0x42   : > { %1350 = vmatmul.msk.bf16.gmra.mxu1 %vm580_vm2, %v1207_v38  ;;  %1359 = vmatmul.msk.bf16.gmra.mxu3 %vm580_vm2, %v1279_v43  ;;  %v1299_v38 = vor.u32 %v1399_v36, %v1298_v35  ;;  %v1385_v43 = vld [vmem:[%s1753_s19 + $0x74] sm:$0xf0] }
  0x43   : > { %v1243_v47 = vor.u32 %v1385_v43, %v1242_v42 }
  0x44   : > { %649 = vmatmul.bf16.gmra.mxu0 %v1195_v44  ;;  %689 = vmatmul.bf16.gmra.mxu2 %v1259_v45  ;;  %v1306_v45 = vld [vmem:[%s1753_s19 + $0xf0] sm:$0xf] }
  0x45   : > { %v1307_v48 = vor.u32 %v1401_v46, %v1306_v45 }
  0x52   : > { %1351 = vmatmul.msk.bf16.gmra.mxu1 %vm580_vm2, %v1215_v50  ;;  %1360 = vmatmul.msk.bf16.gmra.mxu3 %vm580_vm2, %v1287_v55 }
  0x54   : > { %654 = vmatmul.bf16.gmra.mxu0 %v1203_v56  ;;  %694 = vmatmul.bf16.gmra.mxu2 %v1267_v57 }
  0x62   : > { %1352 = vmatmul.msk.bf16.gmra.mxu1 %vm580_vm2, %v1223_v62  ;;  %1361 = vmatmul.msk.bf16.gmra.mxu3 %vm580_vm2, %v1295_v3 }
  0x64   : > { %659 = vmatmul.bf16.gmra.mxu0 %v1211_v4  ;;  %699 = vmatmul.bf16.gmra.mxu2 %v1275_v5 }
  0x72   : > { %1353 = vmatmul.msk.bf16.gmra.mxu1 %vm580_vm2, %v1231_v10  ;;  %1362 = vmatmul.msk.bf16.gmra.mxu3 %vm580_vm2, %v1303_v15 }
  0x74   : > { %664 = vmatmul.bf16.gmra.mxu0 %v1219_v16  ;;  %704 = vmatmul.bf16.gmra.mxu2 %v1283_v17 }
  0x82   : > { %1354 = vmatmul.msk.bf16.gmra.mxu1 %vm580_vm2, %v1239_v22  ;;  %1363 = vmatmul.msk.bf16.gmra.mxu3 %vm580_vm2, %v1311_v27 }
  0x84   : > { %669 = vmatmul.bf16.gmra.mxu0 %v1227_v28  ;;  %709 = vmatmul.bf16.gmra.mxu2 %v1291_v29 }
  0x92   : > { %1355 = vmatmul.msk.bf16.gmra.mxu1 %vm580_vm2, %v1247_v32 }
  0x94   : > { %674 = vmatmul.bf16.gmra.mxu0 %v1235_v37  ;;  %714 = vmatmul.bf16.gmra.mxu2 %v1299_v38 }
  0x9f   : > { %v734_v44 = vpop.f32.mrf.mxu1 }
  0xa2   : > { %1356 = vmatmul.msk.bf16.gmra.mxu1 %vm580_vm2, %v1255_v41 }
  0xa4   : > { %679 = vmatmul.bf16.gmra.mxu0 %v1243_v47  ;;  %719 = vmatmul.bf16.gmra.mxu2 %v1307_v48 }
  0xa5   : > { %v779_v51 = vpop.f32.mrf.mxu3 }
  0xa7   : > { %v736_v49 = vpop.f32.mrf.mxu1 }
  0xad   : > { %v781_v57 = vpop.f32.mrf.mxu3 }
  0xaf   : > { %v739_v50 = vpop.f32.mrf.mxu1 }
  0xb1   : > { %v645_v52 = vpop.f32.mrf.mxu0 }
  0xb2   : > { %v735_v53 = vadd.f32 %v734_v44, %v645_v52 }
  0xb4   : > { %v917_v59 = vadd.f32 %v1853_v54, %v735_v53 }
  0xb5   : > { %v784_v4 = vpop.f32.mrf.mxu3 }
  0xb6   : > { %v949_v62 = vmax.f32 %v917_v59, 0.0 }
  0xb7   : > { %v741_v55 = vpop.f32.mrf.mxu1  ;;  %v1855_v56 = vpop.f32.mrf.mxu2 }
  0xb9   : > { %v647_v58 = vpop.f32.mrf.mxu0 }
  0xba   : > { %v737_v60 = vadd.f32 %v736_v49, %v647_v58 }
  0xbc   : > { %v918_v61 = vadd.f32 %v1853_v54, %v737_v60 }
  0xbd   : > { %v786_v12 = vpop.f32.mrf.mxu3 }
  0xbe   : > { %v950_v63 = vmax.f32 %v918_v61, 0.0 }
  0xbf   : > { %v744_v0 = vpop.f32.mrf.mxu1  ;;  %v1862_v2 = vpop.f32.mrf.mxu2 }
  0xc0   : > { %v1415_v1 = vpack.c.bf16 %v950_v63, %v949_v62 }
  0xc1   : > { %v650_v3 = vpop.f32.mrf.mxu0 }
  0xc2   : > { %1416 = vst [vmem:[%s1864_s11] sm:$0xff] %v1415_v1   ;;  %v740_v5 = vadd.f32 %v739_v50, %v650_v3 }
  0xc4   : > { %v919_v9 = vadd.f32 %v1853_v54, %v740_v5 }
  0xc5   : > { %v789_v27 = vpop.f32.mrf.mxu3 }
  0xc6   : > { %v951_v14 = vmax.f32 %v919_v9, 0.0 }
  0xc7   : > { %v746_v6 = vpop.f32.mrf.mxu1  ;;  %v690_v7 = vpop.f32.mrf.mxu2 }
  0xc8   : > { %v780_v13 = vadd.f32 %v779_v51, %v690_v7 }
  0xc9   : > { %v652_v8 = vpop.f32.mrf.mxu0 }
  0xca   : > { %v742_v10 = vadd.f32 %v741_v55, %v652_v8  ;;  %v935_v19 = vadd.f32 %v1853_v54, %v780_v13 }
  0xcc   : > { %v920_v11 = vadd.f32 %v1853_v54, %v742_v10  ;;  %v967_v23 = vmax.f32 %v935_v19, 0.0 }
  0xcd   : > { %v791_v40 = vpop.f32.mrf.mxu3 }
  0xce   : > { %v952_v15 = vmax.f32 %v920_v11, 0.0 }
  0xcf   : > { %v749_v16 = vpop.f32.mrf.mxu1  ;;  %v692_v18 = vpop.f32.mrf.mxu2 }
  0xd0   : > { %v1420_v17 = vpack.c.bf16 %v952_v15, %v951_v14  ;;  %v782_v20 = vadd.f32 %v781_v57, %v692_v18 }
  0xd1   : > { %v655_v21 = vpop.f32.mrf.mxu0 }
  0xd2   : > { %1492 = vst [vmem:[%s1864_s11 + $0x8] sm:$0xff] %v1420_v17   ;;  %v936_v22 = vadd.f32 %v1853_v54, %v782_v20  ;;  %v745_v25 = vadd.f32 %v744_v0, %v655_v21 }
  0xd4   : > { %v968_v24 = vmax.f32 %v936_v22, 0.0  ;;  %v921_v31 = vadd.f32 %v1853_v54, %v745_v25 }
  0xd5   : > { %v794_v55 = vpop.f32.mrf.mxu3 }
  0xd6   : > { %v1460_v28 = vpack.c.bf16 %v968_v24, %v967_v23  ;;  %v953_v35 = vmax.f32 %v921_v31, 0.0 }
  0xd7   : > { %v751_v26 = vpop.f32.mrf.mxu1  ;;  %v695_v29 = vpop.f32.mrf.mxu2 }
  0xd8   : > { %1500 = vst [vmem:[%s1864_s11 + $0x48] sm:$0xff] %v1460_v28   ;;  %v785_v34 = vadd.f32 %v784_v4, %v695_v29 }
  0xd9   : > { %v657_v30 = vpop.f32.mrf.mxu0 }
  0xda   : > { %v747_v32 = vadd.f32 %v746_v6, %v657_v30  ;;  %v937_v41 = vadd.f32 %v1853_v54, %v785_v34 }
  0xdc   : > { %v922_v33 = vadd.f32 %v1853_v54, %v747_v32  ;;  %v969_v45 = vmax.f32 %v937_v41, 0.0 }
  0xdd   : > { %v796_v5 = vpop.f32.mrf.mxu3 }
  0xde   : > { %v954_v36 = vmax.f32 %v922_v33, 0.0 }
  0xdf   : > { %v754_v37 = vpop.f32.mrf.mxu1  ;;  %v697_v39 = vpop.f32.mrf.mxu2 }
  0xe0   : > { %v1425_v38 = vpack.c.bf16 %v954_v36, %v953_v35  ;;  %v787_v42 = vadd.f32 %v786_v12, %v697_v39 }
  0xe1   : > { %v660_v43 = vpop.f32.mrf.mxu0 }
  0xe2   : > { %1493 = vst [vmem:[%s1864_s11 + $0x10] sm:$0xff] %v1425_v38   ;;  %v938_v44 = vadd.f32 %v1853_v54, %v787_v42  ;;  %v750_v47 = vadd.f32 %v749_v16, %v660_v43 }
  0xe4   : > { %v970_v46 = vmax.f32 %v938_v44, 0.0  ;;  %v923_v52 = vadd.f32 %v1853_v54, %v750_v47 }
  0xe5   : > { %v799_v20 = vpop.f32.mrf.mxu3 }
  0xe6   : > { %v1465_v49 = vpack.c.bf16 %v970_v46, %v969_v45  ;;  %v955_v59 = vmax.f32 %v923_v52, 0.0 }
  0xe7   : > { %v756_v48 = vpop.f32.mrf.mxu1  ;;  %v700_v50 = vpop.f32.mrf.mxu2 }
  0xe8   : > { %1501 = vst [vmem:[%s1864_s11 + $0x50] sm:$0xff] %v1465_v49   ;;  %v790_v58 = vadd.f32 %v789_v27, %v700_v50 }
  0xe9   : > { %v662_v51 = vpop.f32.mrf.mxu0 }
  0xea   : > { %v752_v53 = vadd.f32 %v751_v26, %v662_v51  ;;  %v939_v0 = vadd.f32 %v1853_v54, %v790_v58 }
  0xec   : > { %v924_v57 = vadd.f32 %v1853_v54, %v752_v53  ;;  %v971_v6 = vmax.f32 %v939_v0, 0.0 }
  0xed   : > { %v801_v33 = vpop.f32.mrf.mxu3 }
  0xee   : > { %v956_v60 = vmax.f32 %v924_v57, 0.0 }
  0xef   : > { %v759_v61 = vpop.f32.mrf.mxu1  ;;  %v702_v63 = vpop.f32.mrf.mxu2 }
  0xf0   : > { %v1430_v62 = vpack.c.bf16 %v956_v60, %v955_v59  ;;  %v792_v1 = vadd.f32 %v791_v40, %v702_v63 }
  0xf1   : > { %v665_v3 = vpop.f32.mrf.mxu0 }
  0xf2   : > { %1494 = vst [vmem:[%s1864_s11 + $0x18] sm:$0xff] %v1430_v62   ;;  %v940_v4 = vadd.f32 %v1853_v54, %v792_v1  ;;  %v755_v8 = vadd.f32 %v754_v37, %v665_v3 }
  0xf4   : > { %v972_v7 = vmax.f32 %v940_v4, 0.0  ;;  %v925_v13 = vadd.f32 %v1853_v54, %v755_v8 }
  0xf5   : > { %v804_v47 = vpop.f32.mrf.mxu3 }
  0xf6   : > { %v1470_v10 = vpack.c.bf16 %v972_v7, %v971_v6  ;;  %v957_v17 = vmax.f32 %v925_v13, 0.0 }
  0xf7   : > { %v761_v9 = vpop.f32.mrf.mxu1  ;;  %v705_v11 = vpop.f32.mrf.mxu2 }
  0xf8   : > { %1502 = vst [vmem:[%s1864_s11 + $0x58] sm:$0xff] %v1470_v10   ;;  %v795_v16 = vadd.f32 %v794_v55, %v705_v11 }
  0xf9   : > { %v667_v12 = vpop.f32.mrf.mxu0 }
  0xfa   : > { %v757_v14 = vadd.f32 %v756_v48, %v667_v12  ;;  %v941_v23 = vadd.f32 %v1853_v54, %v795_v16 }
  0xfc   : > { %v926_v15 = vadd.f32 %v1853_v54, %v757_v14  ;;  %v973_v27 = vmax.f32 %v941_v23, 0.0 }
  0xfd   : > { %v806_v60 = vpop.f32.mrf.mxu3 }
  0xfe   : > { %v958_v18 = vmax.f32 %v926_v15, 0.0 }
  0xff   : > { %v764_v19 = vpop.f32.mrf.mxu1  ;;  %v707_v22 = vpop.f32.mrf.mxu2 }
 0x100   : > { %v1435_v21 = vpack.c.bf16 %v958_v18, %v957_v17  ;;  %v797_v24 = vadd.f32 %v796_v5, %v707_v22 }
 0x101   : > { %v670_v25 = vpop.f32.mrf.mxu0 }
 0x102   : > { %1495 = vst [vmem:[%s1864_s11 + $0x20] sm:$0xff] %v1435_v21   ;;  %v942_v26 = vadd.f32 %v1853_v54, %v797_v24  ;;  %v760_v29 = vadd.f32 %v759_v61, %v670_v25 }
 0x104   : > { %v974_v28 = vmax.f32 %v942_v26, 0.0  ;;  %v927_v35 = vadd.f32 %v1853_v54, %v760_v29 }
 0x105   : > { %v809_v12 = vpop.f32.mrf.mxu3 }
 0x106   : > { %v1475_v31 = vpack.c.bf16 %v974_v28, %v973_v27  ;;  %v959_v39 = vmax.f32 %v927_v35, 0.0 }
 0x107   : > { %v766_v30 = vpop.f32.mrf.mxu1  ;;  %v710_v32 = vpop.f32.mrf.mxu2 }
 0x108   : > { %1503 = vst [vmem:[%s1864_s11 + $0x60] sm:$0xff] %v1475_v31   ;;  %v800_v38 = vadd.f32 %v799_v20, %v710_v32 }
 0x109   : > { %v672_v34 = vpop.f32.mrf.mxu0 }
 0x10a   : > { %v762_v36 = vadd.f32 %v761_v9, %v672_v34  ;;  %v943_v44 = vadd.f32 %v1853_v54, %v800_v38 }
 0x10c   : > { %v928_v37 = vadd.f32 %v1853_v54, %v762_v36  ;;  %v975_v49 = vmax.f32 %v943_v44, 0.0 }
 0x10e   : > { %v960_v40 = vmax.f32 %v928_v37, 0.0 }
 0x10f   : > { %v769_v41 = vpop.f32.mrf.mxu1  ;;  %v712_v43 = vpop.f32.mrf.mxu2 }
 0x110   : > { %v1440_v42 = vpack.c.bf16 %v960_v40, %v959_v39  ;;  %v802_v45 = vadd.f32 %v801_v33, %v712_v43 }
 0x111   : > { %v675_v46 = vpop.f32.mrf.mxu0 }
 0x112   : > { %1496 = vst [vmem:[%s1864_s11 + $0x28] sm:$0xff] %v1440_v42   ;;  %v944_v48 = vadd.f32 %v1853_v54, %v802_v45  ;;  %v765_v51 = vadd.f32 %v764_v19, %v675_v46 }
 0x114   : > { %v976_v50 = vmax.f32 %v944_v48, 0.0  ;;  %v929_v58 = vadd.f32 %v1853_v54, %v765_v51 }
 0x116   : > { %v1480_v53 = vpack.c.bf16 %v976_v50, %v975_v49  ;;  %v961_v63 = vmax.f32 %v929_v58, 0.0 }
 0x117   : > { %v771_v52 = vpop.f32.mrf.mxu1  ;;  %v715_v55 = vpop.f32.mrf.mxu2 }
 0x118   : > { %1504 = vst [vmem:[%s1864_s11 + $0x68] sm:$0xff] %v1480_v53   ;;  %v805_v62 = vadd.f32 %v804_v47, %v715_v55 }
 0x119   : > { %v677_v57 = vpop.f32.mrf.mxu0 }
 0x11a   : > { %v767_v59 = vadd.f32 %v766_v30, %v677_v57  ;;  %v945_v5 = vadd.f32 %v1853_v54, %v805_v62 }
 0x11c   : > { %v930_v61 = vadd.f32 %v1853_v54, %v767_v59  ;;  %v977_v10 = vmax.f32 %v945_v5, 0.0 }
 0x11e   : > { %v962_v0 = vmax.f32 %v930_v61, 0.0 }
 0x11f   : > { %v774_v1 = vpop.f32.mrf.mxu1  ;;  %v717_v4 = vpop.f32.mrf.mxu2 }
 0x120   : > { %v1445_v3 = vpack.c.bf16 %v962_v0, %v961_v63  ;;  %v807_v6 = vadd.f32 %v806_v60, %v717_v4  ;;  %v775_v8 = vadd.f32 %v774_v1, %v1855_v56 }
 0x121   : > { %v680_v7 = vpop.f32.mrf.mxu0 }
 0x122   : > { %1497 = vst [vmem:[%s1864_s11 + $0x30] sm:$0xff] %v1445_v3   ;;  %v946_v9 = vadd.f32 %v1853_v54, %v807_v6  ;;  %v770_v13 = vadd.f32 %v769_v41, %v680_v7  ;;  %v933_v15 = vadd.f32 %v1853_v54, %v775_v8 }
 0x124   : > { %v978_v11 = vmax.f32 %v946_v9, 0.0  ;;  %v931_v56 = vadd.f32 %v1853_v54, %v770_v13  ;;  %v965_v22 = vmax.f32 %v933_v15, 0.0 }
 0x126   : > { %v1485_v16 = vpack.c.bf16 %v978_v11, %v977_v10  ;;  %v963_v27 = vmax.f32 %v931_v56, 0.0 }
 0x127   : > { %v776_v14 = vpop.f32.mrf.mxu1  ;;  %v720_v18 = vpop.f32.mrf.mxu2 }
 0x128   : > { %v777_v17 = vadd.f32 %v776_v14, %v1862_v2  ;;  %1505 = vst [vmem:[%s1864_s11 + $0x70] sm:$0xff] %v1485_v16   ;;  %v810_v26 = vadd.f32 %v809_v12, %v720_v18  ;;  %v811_v2 = vpop.f32.mrf.mxu3 }
 0x129   : > { %v682_v20 = vpop.f32.mrf.mxu0 }
 0x12a   : > { %v934_v19 = vadd.f32 %v1853_v54, %v777_v17  ;;  %v772_v21 = vadd.f32 %v771_v52, %v682_v20  ;;  %v947_v31 = vadd.f32 %v1853_v54, %v810_v26 }
 0x12c   : > { %v966_v23 = vmax.f32 %v934_v19, 0.0  ;;  %v932_v24 = vadd.f32 %v1853_v54, %v772_v21  ;;  %v979_v34 = vmax.f32 %v947_v31, 0.0 }
 0x12e   : > { %v1455_v25 = vpack.c.bf16 %v966_v23, %v965_v22  ;;  %v964_v28 = vmax.f32 %v932_v24, 0.0 }
 0x12f   : > { %v722_v30 = vpop.f32.mrf.mxu2 }
 0x130   : > { %1499 = vst [vmem:[%s1864_s11 + $0x40] sm:$0xff] %v1455_v25   ;;  %v1450_v29 = vpack.c.bf16 %v964_v28, %v963_v27  ;;  %v812_v32 = vadd.f32 %v811_v2, %v722_v30 }
 0x132   : > { %1498 = vst [vmem:[%s1864_s11 + $0x38] sm:$0xff] %v1450_v29   ;;  %v948_v33 = vadd.f32 %v1853_v54, %v812_v32 }
 0x134   : > { %v980_v35 = vmax.f32 %v948_v33, 0.0 }
 0x136   : > { %v1490_v36 = vpack.c.bf16 %v980_v35, %v979_v34 }
 0x138   : > { %1506 = vst [vmem:[%s1864_s11 + $0x78] sm:$0xff] %v1490_v36  }
 0x139   : > { %1603 = shalt.err (!%p1600_p5)
}
 0x13a   : > { %s1657_s8 = smov 64   ;;  %s1658_s9 = smov 4  }
 0x13b   : > { %1517 = dma.vmem_to_hbm [thread:$0]  (%p1719_p4), %s1060_s15, 2048, %s1062_s26, %s1046_s27, %s1657_s8, %s1657_s8, %s1658_s9  }
 0x13c PF: > { %p1523_p6 = scmp.ge.s32.totalorder %s1654_s17, 2  ;;  %s1076_s10 = sand.u32 1, %s1634_s12  }
 0x13d   : > { %s1077_s11 = scalar_lea.sflag [#allocation4], %s1076_s10 }
 0x13e   : > { %p1520_p7 = pnand %p1523_p6, %p1726_p8 }
 0x140   : > { %p1521_p9 = pneg %p1520_p7 }
 0x142   : > { %1629 = dma.done.wait (%p1521_p9), %s1077_s11, 2048  }
 0x143   : > { %1631 = vsyncadd (%p1521_p9), %s1077_s11, 4294965248  ;;  %s16_s17 = sadd.s32 1, %s1654_s17   ;;  %s1959_s12 = smov %s1638_s13 }
 0x144   : > { %p13_p10 = scmp.ge.s32.totalorder %s16_s17, 4   ;;  %s1960_s13 = smov %s1642_s14 }
 0x145   : > { %s1961_s14 = smov %s1732_s25  ;;  %s1962_s15 = smov %s1650_s16 }
 0x146   : > { %s1963_s16 = smov %s1965_s20  ;;  %15 = sbr.rel (!%p13_p10) target bundleno = 4 (0x4), region = 81 }
 0x14b   :  { %1083 = vsyncpa [#allocation4], 1 }
 0x14c   :  { %1085 = vsyncpa [#allocation4 + $0x1], 1 }

</bundles_post_ra>
